<compile_context>
chip_gen: v6e
topology: v6e:2x2x1
jax: 0.10.0
libtpu: 0.0.40
codegen_flags: <defaults>
</compile_context>

<pallas_src>
from functools import partial

import jax
import jax.numpy as jnp
from jax.experimental import pallas as pl
from jax.experimental.pallas import tpu as pltpu


def _spatial_atten_kernel(cw_ref, p_ref, rel_ref, cm_ref, gf_ref, out_ref,
                          pad_ref, *, H, W):
    # cw_ref:  SMEM (25,) f32      -- conv weight for the fsum channel, (ki, kj)
    # p_ref:   VMEM (1, C, 1) f32  -- atn(instance_params) column, this instance
    # rel_ref: VMEM (1, 1, HW) f32 -- precomputed rel-coord conv + bias plane
    # cm_ref:  VMEM (4, HW) f32    -- output-column validity masks (dj=0,1,3,4)
    # gf_ref:  VMEM (1, C, HW) f32 -- lane-dense global_features block
    # out_ref: VMEM (1, C, HW) f32 -- lane-dense output block
    # pad_ref: VMEM (1, P) f32     -- zero-padded flat conv source (scratch)
    HW = H * W
    LO = 2 * W + 2                          # flat halo: 2 rows + 2 cols of zeros

    gf = gf_ref[0]                                               # (C, HW)

    # ---- fsum: vectorized channel-weighted reduction (VPU mul + XLU reduce) --
    fsum = jnp.sum(gf * p_ref[0], axis=0, keepdims=True)         # (1, HW)

    # ---- zero-padded flat conv source ----------------------------------------
    # Full-width unmasked zero store, then one masked interior store of fsum.
    # The halo stays zero every step (re-written each step; see review note on
    # not hoisting the border init out of the per-step body).
    pad_ref[...] = jnp.zeros_like(pad_ref)
    pad_ref[:, LO:LO + HW] = fsum

    # ---- 5x5 conv over the fsum plane only (25 taps) --------------------------
    # Grouped by dj: 5 independent accumulator chains (ILP on the VALU slots);
    # each tap is a shifted static slice of the padded flat row, so row
    # out-of-range taps read the zero halo and only the 4 column masks remain.
    partials = []
    for dj in range(5):
        acc = None
        for di in range(5):
            s = LO + (di - 2) * W + (dj - 2)
            t = cw_ref[di * 5 + dj] * pad_ref[:, s:s + HW]
            acc = t if acc is None else acc + t
        partials.append(acc)

    conv = ((cm_ref[0:1, :] * partials[0] + cm_ref[1:2, :] * partials[1])
            + (partials[2] + cm_ref[2:3, :] * partials[3]))
    conv = conv + cm_ref[3:4, :] * partials[4]

    # ---- sigmoid mask (rel-coord conv contribution + conv bias folded in) ----
    mask = jax.nn.sigmoid(conv + rel_ref[0])                      # (1, HW)

    # ---- apply mask lane-dense ------------------------------------------------
    out_ref[0] = (gf * mask).astype(out_ref.dtype)


# ------------------------------ Wrapper --------------------------------------
def spatial_atten(global_features, instance_params, instance_inds,
                  atn_w, atn_b, conv_w, conv_b):
    B, C, H, W = global_features.shape
    n_inst = instance_inds.shape[0]
    assert n_inst == B, "SpatialAtten requires one instance per batch row"
    f32 = jnp.float32
    HW = H * W
    LO = 2 * W + 2
    P = ((HW + 2 * LO + 127) // 128) * 128            # padded flat row length

    # --- tiny per-instance precompute in plain XLA ----------------------------
    # nn.Linear once (removes the per-grid-step M=1 matmul).
    params = (instance_params.astype(f32) @ atn_w + atn_b).reshape(B, C, 1)

    # Relative-coordinate planes exactly as the reference (stride-1 locations,
    # stride // 2 == 0 offset, torch.flip -> (x, y), /32), convolved with the
    # two coordinate input-channels of the 5x5 weight; conv bias folded in.
    xs = jnp.arange(W, dtype=f32)
    ys = jnp.arange(H, dtype=f32)
    X, Y = jnp.meshgrid(xs, ys)                                   # (H, W)
    relx = (instance_inds[:, 1].astype(f32)[:, None, None] - X[None]) / 32.0
    rely = (instance_inds[:, 0].astype(f32)[:, None, None] - Y[None]) / 32.0
    rel = jnp.stack([relx, rely], axis=1)                         # (B, 2, H, W)
    rel_bias = jax.lax.conv_general_dilated(
        rel, conv_w[None, 1:3], window_strides=(1, 1), padding="SAME",
        dimension_numbers=("NCHW", "OIHW", "NCHW")) + conv_b.reshape(1, 1, 1, 1)
    rel_bias = rel_bias.reshape(B, 1, HW)                         # (B, 1, HW)

    # Output-column validity masks for dj in (0, 1, 3, 4); instance-independent,
    # so the block index is constant and the array is DMA'd into VMEM once.
    x_of = jnp.arange(HW, dtype=jnp.int32) % W
    col_masks = jnp.stack([x_of >= 2, x_of >= 1,
                           x_of < W - 1, x_of < W - 2]).astype(f32)   # (4, HW)

    gf_flat = global_features.astype(f32).reshape(B, C, HW)   # free: contiguous

    # Raise the scoped VMEM limit only if the double-buffered blocks need it
    # (never at these test shapes, so the known-good default path is taken).
    block_bytes = 4 * (2 * C * HW + HW + C)
    vmem_needed = 2 * block_bytes + 4 * (4 * HW) + 4 * P + (2 << 20)
    vmem_limit = int(vmem_needed) if vmem_needed > (32 << 20) else None
    # TODO(synk): production shapes (C~256, 128x128 maps) need a C-tile grid
    # axis (two-phase: accumulate fsum across C tiles with that axis
    # "arbitrary", then apply the mask on a second C pass or hold gf resident
    # via manual DMA) so blocks fit v7x's 64 MiB VMEM, give >B grid steps for
    # DMA/compute overlap, and stream gf/out as bf16; unnecessary at this size.

    kernel = partial(_spatial_atten_kernel, H=H, W=W)

    out_flat = pl.pallas_call(
        kernel,
        out_shape=jax.ShapeDtypeStruct((B, C, HW), f32),
        grid=(B,),
        in_specs=[
            pl.BlockSpec(memory_space=pltpu.MemorySpace.SMEM),    # conv_w[0] flat
            pl.BlockSpec((1, C, 1), lambda b: (b, 0, 0)),         # params column
            pl.BlockSpec((1, 1, HW), lambda b: (b, 0, 0)),        # rel-coord bias
            pl.BlockSpec((4, HW), lambda b: (0, 0)),              # col masks (const)
            pl.BlockSpec((1, C, HW), lambda b: (b, 0, 0)),        # gf lane-dense
        ],
        out_specs=pl.BlockSpec((1, C, HW), lambda b: (b, 0, 0)),
        scratch_shapes=[pltpu.VMEM((1, P), f32)],                 # flat conv source
        compiler_params=pltpu.CompilerParams(
            dimension_semantics=("parallel",),
            vmem_limit_bytes=vmem_limit),
    )(conv_w[0].reshape(-1).astype(f32), params, rel_bias, col_masks, gf_flat)

    return out_flat.reshape(B, C, H, W)


# --------------------------- Pure-JAX reference -------------------------------
def reference(gf, ip, inds, atn_w, atn_b, conv_w, conv_b):
    B, C, H, W = gf.shape
    params = ip @ atn_w + atn_b                                   # (B, C)
    fsum = jnp.sum(gf * params[:, :, None, None], axis=1, keepdims=True)
    X, Y = jnp.meshgrid(jnp.arange(W, dtype=jnp.float32),
                        jnp.arange(H, dtype=jnp.float32))          # (H, W)
    relx = (inds[:, 1].astype(jnp.float32)[:, None, None] - X[None]) / 32.0
    rely = (inds[:, 0].astype(jnp.float32)[:, None, None] - Y[None]) / 32.0
    inp = jnp.concatenate([fsum, relx[:, None], rely[:, None]], axis=1)
    mask = jax.lax.conv_general_dilated(
        inp, conv_w[None], window_strides=(1, 1), padding="SAME",
        dimension_numbers=("NCHW", "OIHW", "NCHW"))
    mask = jax.nn.sigmoid(mask + conv_b)
    return gf * mask


if __name__ == "__main__":
    B, C, H, W = 2, 4, 16, 16     # n_inst == B
    Cin = 8                       # Linear in_channels; out_channels == C

    key = jax.random.PRNGKey(0)
    k1, k2, k3, k4, k5, k6, k7 = jax.random.split(key, 7)
    global_features = jax.random.normal(k1, (B, C, H, W), dtype=jnp.float32)
    instance_params = jax.random.normal(k2, (B, Cin), dtype=jnp.float32)
    instance_inds = jax.random.randint(k3, (B, 2), 0, H, dtype=jnp.int32)  # (y, x)

    # Deterministic synthetic parameters (Linear(Cin, C) stored as (Cin, C);
    # Conv2d(3, 1, 5) weight stored as (3, 5, 5) + scalar bias).
    atn_w = 0.1 * jax.random.normal(k4, (Cin, C), dtype=jnp.float32)
    atn_b = 0.1 * jax.random.normal(k5, (C,), dtype=jnp.float32)
    conv_w = 0.1 * jax.random.normal(k6, (3, 5, 5), dtype=jnp.float32)
    conv_b = 0.1 * jax.random.normal(k7, (1,), dtype=jnp.float32)

    out = spatial_atten(global_features, instance_params, instance_inds,
                        atn_w, atn_b, conv_w, conv_b)
    out = jax.block_until_ready(out)

    ref_out = reference(global_features, instance_params, instance_inds,
                        atn_w, atn_b, conv_w, conv_b)
    err = float(jnp.max(jnp.abs(out - ref_out)))
    assert err < 1e-3, f"max abs error {err}"
    print("KERNEL_OK")
</pallas_src>

<mosaic_0001>
module attributes {stable_mosaic.version = 11 : i64} {
  func.func @_spatial_atten_kernel(%arg0: i32, %arg1: memref<25xf32, #tpu.memory_space<smem>>, %arg2: memref<1x4x1xf32, #tpu.memory_space<vmem>>, %arg3: memref<1x1x256xf32, #tpu.memory_space<vmem>>, %arg4: memref<4x256xf32, #tpu.memory_space<vmem>>, %arg5: memref<1x4x256xf32, #tpu.memory_space<vmem>>, %arg6: memref<1x4x256xf32, #tpu.memory_space<vmem>>, %arg7: memref<1x384xf32, #tpu.memory_space<vmem>>) attributes {dimension_semantics = [#tpu.dimension_semantics<parallel>], iteration_bounds = array<i64: 2>, scalar_prefetch = 0 : i64, scratch_operands = 1 : i64, tpu.core_type = #tpu.core_type<tc>, window_params = [{transform_indices = @transform_0, window_bounds = array<i64: 25>}, {transform_indices = @transform_1, window_bounds = array<i64: 1, 4, 1>}, {transform_indices = @transform_2, window_bounds = array<i64: 1, 1, 256>}, {pipeline_mode = #tpu.pipeline_mode<synchronous>, transform_indices = @transform_3, window_bounds = array<i64: 4, 256>}, {transform_indices = @transform_4, window_bounds = array<i64: 1, 4, 256>}, {transform_indices = @transform_5, window_bounds = array<i64: 1, 4, 256>}]} {
    %c0 = arith.constant 0 : index
    %c0_0 = arith.constant 0 : index
    %c0_1 = arith.constant 0 : index
    %0 = vector.load %arg5[%c0, %c0_0, %c0_1] : memref<1x4x256xf32, #tpu.memory_space<vmem>>, vector<1x4x256xf32>
    %1 = vector.shape_cast %0 : vector<1x4x256xf32> to vector<4x256xf32>
    %c0_2 = arith.constant 0 : index
    %c0_3 = arith.constant 0 : index
    %c0_4 = arith.constant 0 : index
    %2 = vector.load %arg2[%c0_2, %c0_3, %c0_4] : memref<1x4x1xf32, #tpu.memory_space<vmem>>, vector<1x4x1xf32>
    %3 = vector.shape_cast %2 : vector<1x4x1xf32> to vector<4x1xf32>
    %4 = vector.broadcast %3 : vector<4x1xf32> to vector<4x256xf32>
    %5 = arith.mulf %1, %4 : vector<4x256xf32>
    %cst = arith.constant dense<0.000000e+00> : vector<256xf32>
    %6 = vector.multi_reduction <add>, %5, %cst [0] : vector<4x256xf32> to vector<256xf32>
    %7 = vector.shape_cast %6 : vector<256xf32> to vector<1x256xf32>
    %cst_5 = arith.constant 0.000000e+00 : f32
    %8 = vector.broadcast %cst_5 : f32 to vector<1x384xf32>
    %c0_6 = arith.constant 0 : index
    %c0_7 = arith.constant 0 : index
    %9 = vector.load %arg7[%c0_6, %c0_7] : memref<1x384xf32, #tpu.memory_space<vmem>>, vector<1x384xf32>
    tpu.vector_store %arg7[%c0_6, %c0_7], %8 {strides = array<i32>} : memref<1x384xf32, #tpu.memory_space<vmem>>, vector<1x384xf32>,
    %c0_8 = arith.constant 0 : index
    %c34 = arith.constant 34 : index
    %10 = vector.load %arg7[%c0_8, %c34] : memref<1x384xf32, #tpu.memory_space<vmem>>, vector<1x256xf32>
    tpu.vector_store %arg7[%c0_8, %c34], %7 {strides = array<i32>} : memref<1x384xf32, #tpu.memory_space<vmem>>, vector<1x256xf32>,
    %c0_9 = arith.constant 0 : index
    %11 = memref.load %arg1[%c0_9] : memref<25xf32, #tpu.memory_space<smem>>
    %c0_10 = arith.constant 0 : index
    %c0_11 = arith.constant 0 : index
    %12 = vector.load %arg7[%c0_10, %c0_11] : memref<1x384xf32, #tpu.memory_space<vmem>>, vector<1x256xf32>
    %13 = vector.broadcast %11 : f32 to vector<1x256xf32>
    %14 = arith.mulf %13, %12 : vector<1x256xf32>
    %c5 = arith.constant 5 : index
    %15 = memref.load %arg1[%c5] : memref<25xf32, #tpu.memory_space<smem>>
    %c0_12 = arith.constant 0 : index
    %c16 = arith.constant 16 : index
    %16 = vector.load %arg7[%c0_12, %c16] : memref<1x384xf32, #tpu.memory_space<vmem>>, vector<1x256xf32>
    %17 = vector.broadcast %15 : f32 to vector<1x256xf32>
    %18 = arith.mulf %17, %16 : vector<1x256xf32>
    %19 = arith.addf %14, %18 : vector<1x256xf32>
    %c10 = arith.constant 10 : index
    %20 = memref.load %arg1[%c10] : memref<25xf32, #tpu.memory_space<smem>>
    %c0_13 = arith.constant 0 : index
    %c32 = arith.constant 32 : index
    %21 = vector.load %arg7[%c0_13, %c32] : memref<1x384xf32, #tpu.memory_space<vmem>>, vector<1x256xf32>
    %22 = vector.broadcast %20 : f32 to vector<1x256xf32>
    %23 = arith.mulf %22, %21 : vector<1x256xf32>
    %24 = arith.addf %19, %23 : vector<1x256xf32>
    %c15 = arith.constant 15 : index
    %25 = memref.load %arg1[%c15] : memref<25xf32, #tpu.memory_space<smem>>
    %c0_14 = arith.constant 0 : index
    %c48 = arith.constant 48 : index
    %26 = vector.load %arg7[%c0_14, %c48] : memref<1x384xf32, #tpu.memory_space<vmem>>, vector<1x256xf32>
    %27 = vector.broadcast %25 : f32 to vector<1x256xf32>
    %28 = arith.mulf %27, %26 : vector<1x256xf32>
    %29 = arith.addf %24, %28 : vector<1x256xf32>
    %c20 = arith.constant 20 : index
    %30 = memref.load %arg1[%c20] : memref<25xf32, #tpu.memory_space<smem>>
    %c0_15 = arith.constant 0 : index
    %c64 = arith.constant 64 : index
    %31 = vector.load %arg7[%c0_15, %c64] : memref<1x384xf32, #tpu.memory_space<vmem>>, vector<1x256xf32>
    %32 = vector.broadcast %30 : f32 to vector<1x256xf32>
    %33 = arith.mulf %32, %31 : vector<1x256xf32>
    %34 = arith.addf %29, %33 : vector<1x256xf32>
    %c1 = arith.constant 1 : index
    %35 = memref.load %arg1[%c1] : memref<25xf32, #tpu.memory_space<smem>>
    %c0_16 = arith.constant 0 : index
    %c1_17 = arith.constant 1 : index
    %36 = vector.load %arg7[%c0_16, %c1_17] : memref<1x384xf32, #tpu.memory_space<vmem>>, vector<1x256xf32>
    %37 = vector.broadcast %35 : f32 to vector<1x256xf32>
    %38 = arith.mulf %37, %36 : vector<1x256xf32>
    %c6 = arith.constant 6 : index
    %39 = memref.load %arg1[%c6] : memref<25xf32, #tpu.memory_space<smem>>
    %c0_18 = arith.constant 0 : index
    %c17 = arith.constant 17 : index
    %40 = vector.load %arg7[%c0_18, %c17] : memref<1x384xf32, #tpu.memory_space<vmem>>, vector<1x256xf32>
    %41 = vector.broadcast %39 : f32 to vector<1x256xf32>
    %42 = arith.mulf %41, %40 : vector<1x256xf32>
    %43 = arith.addf %38, %42 : vector<1x256xf32>
    %c11 = arith.constant 11 : index
    %44 = memref.load %arg1[%c11] : memref<25xf32, #tpu.memory_space<smem>>
    %c0_19 = arith.constant 0 : index
    %c33 = arith.constant 33 : index
    %45 = vector.load %arg7[%c0_19, %c33] : memref<1x384xf32, #tpu.memory_space<vmem>>, vector<1x256xf32>
    %46 = vector.broadcast %44 : f32 to vector<1x256xf32>
    %47 = arith.mulf %46, %45 : vector<1x256xf32>
    %48 = arith.addf %43, %47 : vector<1x256xf32>
    %c16_20 = arith.constant 16 : index
    %49 = memref.load %arg1[%c16_20] : memref<25xf32, #tpu.memory_space<smem>>
    %c0_21 = arith.constant 0 : index
    %c49 = arith.constant 49 : index
    %50 = vector.load %arg7[%c0_21, %c49] : memref<1x384xf32, #tpu.memory_space<vmem>>, vector<1x256xf32>
    %51 = vector.broadcast %49 : f32 to vector<1x256xf32>
    %52 = arith.mulf %51, %50 : vector<1x256xf32>
    %53 = arith.addf %48, %52 : vector<1x256xf32>
    %c21 = arith.constant 21 : index
    %54 = memref.load %arg1[%c21] : memref<25xf32, #tpu.memory_space<smem>>
    %c0_22 = arith.constant 0 : index
    %c65 = arith.constant 65 : index
    %55 = vector.load %arg7[%c0_22, %c65] : memref<1x384xf32, #tpu.memory_space<vmem>>, vector<1x256xf32>
    %56 = vector.broadcast %54 : f32 to vector<1x256xf32>
    %57 = arith.mulf %56, %55 : vector<1x256xf32>
    %58 = arith.addf %53, %57 : vector<1x256xf32>
    %c2 = arith.constant 2 : index
    %59 = memref.load %arg1[%c2] : memref<25xf32, #tpu.memory_space<smem>>
    %c0_23 = arith.constant 0 : index
    %c2_24 = arith.constant 2 : index
    %60 = vector.load %arg7[%c0_23, %c2_24] : memref<1x384xf32, #tpu.memory_space<vmem>>, vector<1x256xf32>
    %61 = vector.broadcast %59 : f32 to vector<1x256xf32>
    %62 = arith.mulf %61, %60 : vector<1x256xf32>
    %c7 = arith.constant 7 : index
    %63 = memref.load %arg1[%c7] : memref<25xf32, #tpu.memory_space<smem>>
    %c0_25 = arith.constant 0 : index
    %c18 = arith.constant 18 : index
    %64 = vector.load %arg7[%c0_25, %c18] : memref<1x384xf32, #tpu.memory_space<vmem>>, vector<1x256xf32>
    %65 = vector.broadcast %63 : f32 to vector<1x256xf32>
    %66 = arith.mulf %65, %64 : vector<1x256xf32>
    %67 = arith.addf %62, %66 : vector<1x256xf32>
    %c12 = arith.constant 12 : index
    %68 = memref.load %arg1[%c12] : memref<25xf32, #tpu.memory_space<smem>>
    %c0_26 = arith.constant 0 : index
    %c34_27 = arith.constant 34 : index
    %69 = vector.load %arg7[%c0_26, %c34_27] : memref<1x384xf32, #tpu.memory_space<vmem>>, vector<1x256xf32>
    %70 = vector.broadcast %68 : f32 to vector<1x256xf32>
    %71 = arith.mulf %70, %69 : vector<1x256xf32>
    %72 = arith.addf %67, %71 : vector<1x256xf32>
    %c17_28 = arith.constant 17 : index
    %73 = memref.load %arg1[%c17_28] : memref<25xf32, #tpu.memory_space<smem>>
    %c0_29 = arith.constant 0 : index
    %c50 = arith.constant 50 : index
    %74 = vector.load %arg7[%c0_29, %c50] : memref<1x384xf32, #tpu.memory_space<vmem>>, vector<1x256xf32>
    %75 = vector.broadcast %73 : f32 to vector<1x256xf32>
    %76 = arith.mulf %75, %74 : vector<1x256xf32>
    %77 = arith.addf %72, %76 : vector<1x256xf32>
    %c22 = arith.constant 22 : index
    %78 = memref.load %arg1[%c22] : memref<25xf32, #tpu.memory_space<smem>>
    %c0_30 = arith.constant 0 : index
    %c66 = arith.constant 66 : index
    %79 = vector.load %arg7[%c0_30, %c66] : memref<1x384xf32, #tpu.memory_space<vmem>>, vector<1x256xf32>
    %80 = vector.broadcast %78 : f32 to vector<1x256xf32>
    %81 = arith.mulf %80, %79 : vector<1x256xf32>
    %82 = arith.addf %77, %81 : vector<1x256xf32>
    %c3 = arith.constant 3 : index
    %83 = memref.load %arg1[%c3] : memref<25xf32, #tpu.memory_space<smem>>
    %c0_31 = arith.constant 0 : index
    %c3_32 = arith.constant 3 : index
    %84 = vector.load %arg7[%c0_31, %c3_32] : memref<1x384xf32, #tpu.memory_space<vmem>>, vector<1x256xf32>
    %85 = vector.broadcast %83 : f32 to vector<1x256xf32>
    %86 = arith.mulf %85, %84 : vector<1x256xf32>
    %c8 = arith.constant 8 : index
    %87 = memref.load %arg1[%c8] : memref<25xf32, #tpu.memory_space<smem>>
    %c0_33 = arith.constant 0 : index
    %c19 = arith.constant 19 : index
    %88 = vector.load %arg7[%c0_33, %c19] : memref<1x384xf32, #tpu.memory_space<vmem>>, vector<1x256xf32>
    %89 = vector.broadcast %87 : f32 to vector<1x256xf32>
    %90 = arith.mulf %89, %88 : vector<1x256xf32>
    %91 = arith.addf %86, %90 : vector<1x256xf32>
    %c13 = arith.constant 13 : index
    %92 = memref.load %arg1[%c13] : memref<25xf32, #tpu.memory_space<smem>>
    %c0_34 = arith.constant 0 : index
    %c35 = arith.constant 35 : index
    %93 = vector.load %arg7[%c0_34, %c35] : memref<1x384xf32, #tpu.memory_space<vmem>>, vector<1x256xf32>
    %94 = vector.broadcast %92 : f32 to vector<1x256xf32>
    %95 = arith.mulf %94, %93 : vector<1x256xf32>
    %96 = arith.addf %91, %95 : vector<1x256xf32>
    %c18_35 = arith.constant 18 : index
    %97 = memref.load %arg1[%c18_35] : memref<25xf32, #tpu.memory_space<smem>>
    %c0_36 = arith.constant 0 : index
    %c51 = arith.constant 51 : index
    %98 = vector.load %arg7[%c0_36, %c51] : memref<1x384xf32, #tpu.memory_space<vmem>>, vector<1x256xf32>
    %99 = vector.broadcast %97 : f32 to vector<1x256xf32>
    %100 = arith.mulf %99, %98 : vector<1x256xf32>
    %101 = arith.addf %96, %100 : vector<1x256xf32>
    %c23 = arith.constant 23 : index
    %102 = memref.load %arg1[%c23] : memref<25xf32, #tpu.memory_space<smem>>
    %c0_37 = arith.constant 0 : index
    %c67 = arith.constant 67 : index
    %103 = vector.load %arg7[%c0_37, %c67] : memref<1x384xf32, #tpu.memory_space<vmem>>, vector<1x256xf32>
    %104 = vector.broadcast %102 : f32 to vector<1x256xf32>
    %105 = arith.mulf %104, %103 : vector<1x256xf32>
    %106 = arith.addf %101, %105 : vector<1x256xf32>
    %c4 = arith.constant 4 : index
    %107 = memref.load %arg1[%c4] : memref<25xf32, #tpu.memory_space<smem>>
    %c0_38 = arith.constant 0 : index
    %c4_39 = arith.constant 4 : index
    %108 = vector.load %arg7[%c0_38, %c4_39] : memref<1x384xf32, #tpu.memory_space<vmem>>, vector<1x256xf32>
    %109 = vector.broadcast %107 : f32 to vector<1x256xf32>
    %110 = arith.mulf %109, %108 : vector<1x256xf32>
    %c9 = arith.constant 9 : index
    %111 = memref.load %arg1[%c9] : memref<25xf32, #tpu.memory_space<smem>>
    %c0_40 = arith.constant 0 : index
    %c20_41 = arith.constant 20 : index
    %112 = vector.load %arg7[%c0_40, %c20_41] : memref<1x384xf32, #tpu.memory_space<vmem>>, vector<1x256xf32>
    %113 = vector.broadcast %111 : f32 to vector<1x256xf32>
    %114 = arith.mulf %113, %112 : vector<1x256xf32>
    %115 = arith.addf %110, %114 : vector<1x256xf32>
    %c14 = arith.constant 14 : index
    %116 = memref.load %arg1[%c14] : memref<25xf32, #tpu.memory_space<smem>>
    %c0_42 = arith.constant 0 : index
    %c36 = arith.constant 36 : index
    %117 = vector.load %arg7[%c0_42, %c36] : memref<1x384xf32, #tpu.memory_space<vmem>>, vector<1x256xf32>
    %118 = vector.broadcast %116 : f32 to vector<1x256xf32>
    %119 = arith.mulf %118, %117 : vector<1x256xf32>
    %120 = arith.addf %115, %119 : vector<1x256xf32>
    %c19_43 = arith.constant 19 : index
    %121 = memref.load %arg1[%c19_43] : memref<25xf32, #tpu.memory_space<smem>>
    %c0_44 = arith.constant 0 : index
    %c52 = arith.constant 52 : index
    %122 = vector.load %arg7[%c0_44, %c52] : memref<1x384xf32, #tpu.memory_space<vmem>>, vector<1x256xf32>
    %123 = vector.broadcast %121 : f32 to vector<1x256xf32>
    %124 = arith.mulf %123, %122 : vector<1x256xf32>
    %125 = arith.addf %120, %124 : vector<1x256xf32>
    %c24 = arith.constant 24 : index
    %126 = memref.load %arg1[%c24] : memref<25xf32, #tpu.memory_space<smem>>
    %c0_45 = arith.constant 0 : index
    %c68 = arith.constant 68 : index
    %127 = vector.load %arg7[%c0_45, %c68] : memref<1x384xf32, #tpu.memory_space<vmem>>, vector<1x256xf32>
    %128 = vector.broadcast %126 : f32 to vector<1x256xf32>
    %129 = arith.mulf %128, %127 : vector<1x256xf32>
    %130 = arith.addf %125, %129 : vector<1x256xf32>
    %c0_46 = arith.constant 0 : index
    %c0_47 = arith.constant 0 : index
    %131 = vector.load %arg4[%c0_46, %c0_47] : memref<4x256xf32, #tpu.memory_space<vmem>>, vector<1x256xf32>
    %132 = arith.mulf %131, %34 : vector<1x256xf32>
    %c1_48 = arith.constant 1 : index
    %c0_49 = arith.constant 0 : index
    %133 = vector.load %arg4[%c1_48, %c0_49] : memref<4x256xf32, #tpu.memory_space<vmem>>, vector<1x256xf32>
    %134 = arith.mulf %133, %58 : vector<1x256xf32>
    %135 = arith.addf %132, %134 : vector<1x256xf32>
    %c2_50 = arith.constant 2 : index
    %c0_51 = arith.constant 0 : index
    %136 = vector.load %arg4[%c2_50, %c0_51] : memref<4x256xf32, #tpu.memory_space<vmem>>, vector<1x256xf32>
    %137 = arith.mulf %136, %106 : vector<1x256xf32>
    %138 = arith.addf %82, %137 : vector<1x256xf32>
    %139 = arith.addf %135, %138 : vector<1x256xf32>
    %c3_52 = arith.constant 3 : index
    %c0_53 = arith.constant 0 : index
    %140 = vector.load %arg4[%c3_52, %c0_53] : memref<4x256xf32, #tpu.memory_space<vmem>>, vector<1x256xf32>
    %141 = arith.mulf %140, %130 : vector<1x256xf32>
    %142 = arith.addf %139, %141 : vector<1x256xf32>
    %c0_54 = arith.constant 0 : index
    %c0_55 = arith.constant 0 : index
    %c0_56 = arith.constant 0 : index
    %143 = vector.load %arg3[%c0_54, %c0_55, %c0_56] : memref<1x1x256xf32, #tpu.memory_space<vmem>>, vector<1x1x256xf32>
    %144 = vector.shape_cast %143 : vector<1x1x256xf32> to vector<1x256xf32>
    %145 = arith.addf %142, %144 : vector<1x256xf32>
    %146 = arith.negf %145 : vector<1x256xf32>
    %147 = math.exp %146 : vector<1x256xf32>
    %cst_57 = arith.constant 1.000000e+00 : f32
    %148 = vector.broadcast %cst_57 : f32 to vector<1x256xf32>
    %149 = arith.addf %148, %147 : vector<1x256xf32>
    %150 = arith.divf %148, %149 : vector<1x256xf32>
    %151 = vector.broadcast %150 : vector<1x256xf32> to vector<4x256xf32>
    %152 = arith.mulf %1, %151 : vector<4x256xf32>
    %c0_58 = arith.constant 0 : index
    %c0_59 = arith.constant 0 : index
    %c0_60 = arith.constant 0 : index
    %153 = vector.load %arg6[%c0_58, %c0_59, %c0_60] : memref<1x4x256xf32, #tpu.memory_space<vmem>>, vector<1x4x256xf32>
    %154 = vector.shape_cast %153 : vector<1x4x256xf32> to vector<4x256xf32>
    %155 = vector.shape_cast %152 : vector<4x256xf32> to vector<1x4x256xf32>
    tpu.vector_store %arg6[%c0_58, %c0_59, %c0_60], %155 {strides = array<i32>} : memref<1x4x256xf32, #tpu.memory_space<vmem>>, vector<1x4x256xf32>,
    return
  }
  func.func @transform_0(%arg0: i32) -> i32 {
    %c0_i32 = arith.constant 0 : i32
    %c0_i32_0 = arith.constant 0 : i32
    return %c0_i32 : i32
  }
  func.func @transform_1(%arg0: i32) -> (i32, i32, i32) {
    %c0_i32 = arith.constant 0 : i32
    %c0_i32_0 = arith.constant 0 : i32
    %c0_i32_1 = arith.constant 0 : i32
    return %arg0, %c0_i32, %c0_i32_0 : i32, i32, i32
  }
  func.func @transform_2(%arg0: i32) -> (i32, i32, i32) {
    %c0_i32 = arith.constant 0 : i32
    %c0_i32_0 = arith.constant 0 : i32
    %c0_i32_1 = arith.constant 0 : i32
    return %arg0, %c0_i32, %c0_i32_0 : i32, i32, i32
  }
  func.func @transform_3(%arg0: i32) -> (i32, i32) {
    %c0_i32 = arith.constant 0 : i32
    %c0_i32_0 = arith.constant 0 : i32
    %c0_i32_1 = arith.constant 0 : i32
    return %c0_i32, %c0_i32_0 : i32, i32
  }
  func.func @transform_4(%arg0: i32) -> (i32, i32, i32) {
    %c0_i32 = arith.constant 0 : i32
    %c0_i32_0 = arith.constant 0 : i32
    %c0_i32_1 = arith.constant 0 : i32
    return %arg0, %c0_i32, %c0_i32_0 : i32, i32, i32
  }
  func.func @transform_5(%arg0: i32) -> (i32, i32, i32) {
    %c0_i32 = arith.constant 0 : i32
    %c0_i32_0 = arith.constant 0 : i32
    %c0_i32_1 = arith.constant 0 : i32
    return %arg0, %c0_i32, %c0_i32_0 : i32, i32, i32
  }
}

</mosaic_0001>

<bundles_post_ra>
// kernel: tpu_custom_call.1
= control target key start
LH: loop header
LB: loop body
LE: loop exit
PB: predicated region body
PF: predicated region fallthrough
CT: control target
= control target key end

     0   :  { %10 = vsyncpa [#allocation6], 0  ;;  %s1373_s0 = inlined_call_operand.vmem [shape: f32[25], index: 0, kind: input, shape index: {}]   ;;  %s1374_s1 = inlined_call_operand.vmem [shape: f32[2,4,1], index: 1, kind: input, shape index: {}]   ;;  %s1375_s2 = inlined_call_operand.hbm [shape: f32[2,1,256], index: 2, kind: input, shape index: {}]   ;;  %s1376_s3 = inlined_call_operand.hbm [shape: f32[4,256], index: 3, kind: input, shape index: {}]   ;;  %s1377_s4 = inlined_call_operand.vmem [shape: f32[2,4,256], index: 4, kind: input, shape index: {}]   ;;  %s1378_s5 = inlined_call_operand.hbm [shape: f32[2,4,256], index: 5, kind: output, shape index: {}]  }
   0x1   :  { %11 = vsyncpa [#allocation4], 0 }
   0x2   :  { %13 = vsyncpa [#allocation4 + $0x1], 0 }
   0x3   :  { %14 = vsyncpa [#allocation9], 0 }
   0x4   :  { %15 = vsyncpa [#allocation5], 0 }
   0x5   :  { %17 = vsyncpa [#allocation5 + $0x1], 0  ;;  %s1119_s18 = smov 0   ;;  %s1121_s19 = smov 0  }
   0x6   :  { %s1123_s20 = smov 0   ;;  %s1125_s21 = smov 0  }
   0x7 LB: > { %s1140_s22 = sadd.s32 4294967295, %s1069_s21   ;;  %s793_s23 = sadd.s32 4294967294, %s1069_s21   ;;  %s1069_s21 = sphi %s1125_s21, %s1402_s21   ;;  %s1065_s20 = sphi %s1123_s20, %s1401_s20   ;;  %s1061_s19 = sphi %s1121_s19, %s1400_s19   ;;  %s1057_s18 = sphi %s1119_s18, %s1399_s18  }
   0x8   : > { %p90_p0 = scmp.ne.s32.totalorder %s1061_s19, %s1057_s18  ;;  %p1379_p1 = scmp.eq.s32.totalorder %s1140_s22, 0 }
   0x9   : > { %p167_p3 = scmp.eq.s32.totalorder %s793_s23, 1  ;;  %p794_p5 = scmp.ge.s32.totalorder %s1069_s21, 1 }
   0xa   : > { %p1149_p4 = por %p1379_p1, %p90_p0  ;;  %p174_p7 = scmp.lt.s32.totalorder %s1069_s21, 3 }
   0xb   : > { %p1154_p6 = por %p167_p3, %p90_p0  ;;  %s187_s28 = sshll.u32 %s1373_s0, 4  ;;  %s188_s28 = int_to_ptr.vmem [resolvable:$true] %s187_s28 }
   0xc   : > { %s1383_s24 = scalar_select %p1149_p4, 1, 0 }
   0xd   : > { %s1384_s25 = scalar_select %p1154_p6, 1, 0 }
   0xe   : > { %p1162_p8 = pnand %p794_p5, %p174_p7  ;;  %s1071_s30 = smov [#allocation8]  }
   0xf   : > { %s198_s6 = sshll.u32 %s1071_s30, 4  ;;  %s1176_s8 = sadd.s32 1, %s1069_s21   ;;  %s199_s6 = int_to_ptr.vmem [resolvable:$true] %s198_s6 }
  0x10   : > { %s1385_s29 = scalar_select %p1162_p8, 1, 0 }
  0x11   : > { %p854_p10 = pneg %p1162_p8  ;;  %s74_s9 = ssub.s32 %s1069_s21, %s1176_s8 }
  0x12   : > { %s928_s10 = scalar_lea.vmem %s188_s28, 16  ;;  %p936_p5 = scmp.lt.s32.totalorder %s188_s28, %s188_s28 }
  0x13   : > { %p1171_p11 = pnand %p854_p10, %p1379_p1  ;;  %p929_p12 = scmp.ne.s32.totalorder %s188_s28, %s928_s10 }
  0x14   : > { %p937_p7 = scmp.lt.s32.totalorder %s928_s10, %s928_s10 }
  0x15   : > { %p930_p13 = pneg %p1171_p11 }
  0x16   : > { %p938_p9 = por %p937_p7, %p936_p5 }
  0x17   : > { %p931_p0 = pnand %p930_p13, %p929_p12 }
  0x19   : > { %p932_p3 = pneg %p931_p0 }
  0x1b   : > { %p939_p2 = pnand %p938_p9, %p932_p3 }
  0x1d   : > { %942 = shalt.err (!%p939_p2)
}
  0x1e   : > { %s1072_s11 = smov [#allocation3]   ;;  %s954_s12 = scalar_lea.vmem %s199_s6, 128 }
  0x1f   : > { %857 = dma.vmem_to_smem (!%p1171_p11), %s188_s28, 16, %s1072_s11, [#allocation6]  }
  0x20   : > { %p955_p10 = scmp.ne.s32.totalorder %s199_s6, %s954_s12  ;;  %p962_p4 = scmp.lt.s32.totalorder %s199_s6, %s199_s6 }
  0x21   : > { %p963_p8 = scmp.lt.s32.totalorder %s954_s12, %s954_s12 }
  0x22   : > { %p957_p1 = pnand %p955_p10, %p930_p13 }
  0x23   : > { %p964_p12 = por %p963_p8, %p962_p4 }
  0x24   : > { %p958_p6 = pneg %p957_p1 }
  0x26   : > { %p965_p0 = pnand %p964_p12, %p958_p6 }
  0x28   : > { %968 = shalt.err (!%p965_p0)
}
  0x29   : > { %860 = dma.hbm_to_vmem [thread:$0]  (!%p1171_p11), %s1376_s3, 128, %s199_s6, [#allocation9]  }
  0x2a   : > { %p75_p1 = scmp.eq.s32.totalorder %s74_s9, 0  ;;  %s77_s15 = sadd.s32 1, %s1065_s20 }
  0x2b   : > { %p84_p2 = scmp.ne.s32.totalorder %s1065_s20, %s1061_s19  ;;  %p85_p4 = scmp.eq.s32.totalorder %s1069_s21, 0 }
  0x2c   : > { %s1194_s16 = scalar_select %p75_p1, %s1065_s20, %s77_s15  }
  0x2d   : > { %p86_p6 = por %p85_p4, %p84_p2  ;;  %p1387_p8 = scmp.eq.s32.totalorder %s1140_s22, 1 }
  0x2e   : > { %p871_p13 = scmp.lt.s32.totalorder %s1069_s21, 2  ;;  %s216_s23 = sand.u32 1, %s1065_s20  }
  0x2f   : > { %p1198_p9 = por %p1387_p8, %p84_p2  ;;  %s798_s26 = sshll.u32 %s216_s23, 1 }
  0x30   : > { %s839_s27 = sshll.u32 %s1069_s21, 5  ;;  %s220_s7 = scalar_lea.vmem [#allocation7], %s798_s26 }
  0x31   : > { %s1388_s17 = scalar_select %p1198_p9, 1, 0 }
  0x32   : > { %s1208_s6 = scalar_lea.hbm %s1375_s2, %s839_s27  ;;  %s228_s9 = sshll.u32 %s220_s7, 4  ;;  %s229_s9 = int_to_ptr.vmem [resolvable:$true] %s228_s9 }
  0x33   : > { %p1210_p11 = pnand %p871_p13, %p86_p6  ;;  %s217_s11 = scalar_lea.sflag [#allocation4], %s216_s23 }
  0x34   : > { %s969_s12 = scalar_lea.hbm %s1208_s6, 32  ;;  %s974_s15 = scalar_lea.hbm %s1375_s2, 64 }
  0x35   : > { %p970_p3 = scmp.ne.s32.totalorder %s1208_s6, %s969_s12  ;;  %p971_p5 = pneg %p1210_p11 }
  0x36   : > { %p975_p12 = scmp.lt.s32.totalorder %s1208_s6, %s1375_s2  ;;  %p976_p0 = scmp.lt.s32.totalorder %s974_s15, %s969_s12 }
  0x37   : > { %p972_p7 = pnand %p971_p5, %p970_p3 }
  0x38   : > { %p977_p1 = por %p976_p0, %p975_p12 }
  0x39   : > { %p973_p10 = pneg %p972_p7 }
  0x3b   : > { %p978_p2 = pnand %p977_p1, %p973_p10 }
  0x3d   : > { %981 = shalt.err (!%p978_p2)
}
  0x3e   : > { %s982_s28 = scalar_lea.vmem %s229_s9, 32  ;;  %s1073_s23 = smov [#allocation7]  }
  0x3f   : > { %p983_p4 = scmp.ne.s32.totalorder %s229_s9, %s982_s28  ;;  %s987_s30 = sshll.u32 %s1073_s23, 4  ;;  %s988_s30 = int_to_ptr.vmem [resolvable:$false] %s987_s30 }
  0x40   : > { %s989_s7 = scalar_lea.vmem %s988_s30, 64  ;;  %p990_p13 = scmp.lt.s32.totalorder %s229_s9, %s988_s30 }
  0x41   : > { %p985_p6 = pnand %p983_p4, %p971_p5  ;;  %p991_p3 = scmp.lt.s32.totalorder %s989_s7, %s982_s28 }
  0x43   : > { %p986_p8 = pneg %p985_p6  ;;  %p992_p7 = por %p991_p3, %p990_p13 }
  0x45   : > { %p993_p9 = pnand %p992_p7, %p986_p8 }
  0x47   : > { %996 = shalt.err (!%p993_p9)
}
  0x48   : > { %864 = dma.hbm_to_vmem [thread:$0]  (!%p1210_p11), %s1208_s6, 32, %s229_s9, %s217_s11  }
  0x49   : > { %p1390_p10 = scmp.ne.s32.totalorder %s1385_s29, 0 }
  0x4a   : > { %p1391_p12 = scmp.eq.s32.totalorder (!%p1390_p10), %s1140_s22, 0 }
  0x4b   : > { %245 = sbr.rel (%p1390_p10) target bundleno = 917 (0x395), region = 40 }
  0x50   : > { %1040 = dma.done.wait (%p1391_p12), [#allocation6], 16   ;;  %p1392_p5 = pmov %p1391_p12 }
  0x51   : > { %s1235_s12 = sand.u32 1, %s1061_s19   ;;  %p1393_p9 = scmp.ne.s32.totalorder %s1383_s24, 0 }
  0x52   : > { %1042 = vsyncadd (%p1392_p5), [#allocation6], 4294967280  ;;  %s803_s13 = sshll.u32 %s1235_s12, 1  ;;  %s252_s14 = scalar_lea.sflag [#allocation4], %s1235_s12 }
  0x53   : > { %s1239_s10 = scalar_lea.vmem [#allocation7], %s803_s13 }
  0x54   : > { %1044 = dma.done.wait (%p1393_p9), %s252_s14, 32  }
  0x55   : > { %1046 = vsyncadd (%p1393_p9), %s252_s14, 4294967264  ;;  %p1394_p11 = pmov %p1392_p5 }
  0x56   : > { %p1395_p0 = pmov %p1392_p5 }
  0x57   : > { %1048 = dma.done.wait (%p1394_p11), [#allocation9], 128  }
  0x58   : > { %1050 = vsyncadd (%p1395_p0), [#allocation9], 4294967168 }
  0x59   : > { %264 = sfence }
  0x5a   : > { %p296_p1 = scmp.lt.s32.totalorder %s1140_s22, 1  ;;  %v1074_v0 = vmov 0   ;;  %v314_v2 = vlaneseq  ;;  %v1075_v3 = vmov 0.0   ;;  %v1076_v4 = vmov 839922192   ;;  %s1078_s23 = smov 34  }
  0x5b   : > { %923 = vset.pattern.permute.xlu0 %v1074_v0  ;;  %v312_v5 = vunpack.c.l.s4 %v1076_v4  ;;  %vm323_vm1 = vcmask 1043456   ;;  %v1077_v21 = vmov 1966171168   ;;  %vm363_vm4 = vcmask 277504   ;;  %s826_s30 = sld [smem:[#allocation3 + $0x12]]  ;;  %s1080_s9 = smov 112  }
  0x5c   : > { %s297_s29 = scalar_select %p296_p1, %s1140_s22, 1  ;;  %vm340_vm0 = vcmp.lt.s32.totalorder %v314_v2, 384  ;;  %v1254_v7 = vshrl.u32 %v314_v2, 7  ;;  %v347_v22 = vunpack.c.l.s4 %v1077_v21  ;;  %vm366_vm2 = vcmp.ge.s32.totalorder %v314_v2, 34 }
  0x5d   : > { %342 = vst.msk [vmem:[#allocation2] sm:$0x7] %vm340_vm0, %v1075_v3  ;;  %v313_v6 = vunpack.c.0.s8 %v312_v5  ;;  %vm367_vm3 = vcmp.lt.s32.totalorder %v314_v2, 290  ;;  %s824_s7 = sld [smem:[#allocation3 + $0x8]]  ;;  %s1082_s27 = smov 64   ;;  %vm382_vm6 = vcmask 916480  }
  0x5e   : > { %s806_s6 = sshll.u32 %s297_s29, 2  ;;  %s840_s24 = sshll.u32 %s297_s29, 3  ;;  %v348_v27 = vunpack.c.0.s8 %v347_v22  ;;  %vm368_vm5 = vmand %vm366_vm2, %vm367_vm3  ;;  %vm393_vm7 = vcmask 785408   ;;  %vm404_vm8 = vcmask 654336   ;;  %vm415_vm9 = vcmask 523264  }
  0x5f   : > { %s299_s15 = scalar_lea.vmem %s1374_s1, %s806_s6  ;;  %s304_s28 = scalar_lea.vmem %s1377_s4, %s840_s24  ;;  %v316_v8 = vsub.s32 %v313_v6, %v1254_v7  ;;  %vm610_vm10 = vcmask 1022976   ;;  %vm618_vm11 = vcmask 15360   ;;  %vm599_vm12 = vcmask 1039360  }
  0x60   : > { %v306_v1 = vld [vmem:[%s299_s15] sm:$0xf]  ;;  %v351_v31 = vsub.s32 %v348_v27, %v1254_v7  ;;  %s825_s13 = sld [smem:[#allocation3 + $0xd]]  ;;  %s1079_s6 = smov 80   ;;  %vm636_vm13 = vcmask 1014784   ;;  %vm626_vm14 = vcmask 1031168  }
  0x61   : > { %309 = vperm.xlu0 %923, %v306_v1   ;;  %v1260_v9 = vld [vmem:[%s304_s28] sm:$0xff]  ;;  %v529_v38 = vstv %s826_s30  ;;  %s827_s14 = sld [smem:[#allocation3 + $0x17]]  ;;  %s1081_s15 = smov 96  }
  0x62   : > { %s814_s29 = sld [smem:[#allocation3 + $0x6]]  ;;  %p1396_p4 = scmp.ne.s32.totalorder %s1388_s17, 0 }
  0x63   : > { %v509_v39 = vstv %s824_s7  ;;  %s819_s11 = sld [smem:[#allocation3 + $0x7]] }
  0x64   : > { %s820_s24 = sld [smem:[#allocation3 + $0xc]] }
  0x65   : > { %s817_s26 = sld [smem:[#allocation3 + $0x15]] }
  0x66   : > { %v519_v43 = vstv %s825_s13  ;;  %s830_s28 = sld [smem:[#allocation3 + $0xe]] }
  0x67   : > { %v539_v45 = vstv %s827_s14  ;;  %s823_s30 = sld [smem:[#allocation3 + $0x3]] }
  0x68   : > { %v423_v47 = vstv %s814_s29  ;;  %s815_s7 = sld [smem:[#allocation3 + $0xb]] }
  0x69   : > { %v466_v49 = vstv %s819_s11  ;;  %s818_s13 = sld [smem:[#allocation3 + $0x2]]  ;;  %s1083_s11 = smov 125  }
  0x6a   : > { %v476_v51 = vstv %s820_s24  ;;  %s816_s14 = sld [smem:[#allocation3 + $0x10]] }
  0x6b   : > { %v453_v53 = vstv %s817_s26  ;;  %s829_s29 = sld [smem:[#allocation3 + $0x9]] }
  0x6c   : > { %v562_v55 = vstv %s830_s28  ;;  %s821_s24 = sld [smem:[#allocation3 + $0x11]] }
  0x6d   : > { %v506_v60 = vstv %s823_s30  ;;  %s822_s26 = sld [smem:[#allocation3 + $0x16]] }
  0x6e   : > { %s832_s28 = sld [smem:[#allocation3 + $0x18]] }
  0x6f   : > { %s811_s30 = sld [smem:[#allocation3 + $0xf]] }
  0x70   : > { %v443_v21 = vstv %s816_s14  ;;  %s812_s14 = sld [smem:[#allocation3 + $0x14]] }
  0xdc   : > { %v310_v10 = vpop.permute.xlu0 %309 }
  0xdd   : > { %v317_v11 = vrot.slane %v310_v10, %v316_v8 }
  0xdf   : > { %v319_v12 = vmul.f32 %v317_v11, %v1260_v9 }
  0xe1   : > { %v321_v13 = vcombine.high %v319_v12, %v319_v12  ;;  %v324_v14 = vsel %vm323_vm1, %v319_v12, 0.0 }
  0xe2   : > { %v325_v15 = vrot.slane %v324_v14, 4 }
  0xe3   : > { %v331_v16 = vsel %vm323_vm1, %v321_v13, 0.0 }
  0xe4   : > { %v326_v17 = vadd.f32 %v325_v15, %v324_v14  ;;  %v332_v18 = vrot.slane %v331_v16, 4 }
  0xe6   : > { %v327_v19 = vrot.slane %v326_v17, 2  ;;  %v333_v20 = vadd.f32 %v332_v18, %v331_v16  ;;  %v433_v16 = vstv %s815_s7  ;;  %s813_s7 = sld [smem:[#allocation3 + $0x1]] }
  0xe8   : > { %v328_v23 = vadd.f32 %v327_v19, %v326_v17  ;;  %v334_v24 = vrot.slane %v333_v20, 2  ;;  %v463_v17 = vstv %s818_s13  ;;  %s810_s13 = sld [smem:[#allocation3 + $0xa]] }
  0xea   : > { %v329_v25 = vrot.slane %v328_v23, 1  ;;  %v335_v26 = vadd.f32 %v334_v24, %v333_v20 }
  0xec   : > { %v336_v28 = vrot.slane %v335_v26, 1  ;;  %v330_v29 = vadd.f32 %v329_v25, %v328_v23 }
  0xee   : > { %v337_v30 = vadd.f32 %v336_v28, %v335_v26  ;;  %v552_v28 = vstv %s829_s29  ;;  %s1087_s29 = smov 126  }
  0xf0   : > { %v345_v32 = vcombine.low %v330_v29, %v337_v30 }
  0xf2   : > { %v352_v33 = vrot.slane %v345_v32, %v351_v31  ;;  %v486_v32 = vstv %s821_s24  ;;  %s805_s24 = sshll.u32 %s1235_s12, 3 }
  0xf4   : > { %v359_v34 = vrot.slane %v352_v33, %v351_v31 }
  0xf6   : > { %360 = vrot.lane.b32.xlu0 %v359_v34, %s1078_s23  ;;  %s831_s23 = sld [smem:[#allocation3 + $0x13]]  ;;  %v496_v34 = vstv %s822_s26  ;;  %s841_s26 = sshll.u32 %s1140_s22, 7 }
  0xfc   : > { %v572_v57 = vstv %s831_s23  ;;  %s809_s23 = sld [smem:[#allocation3 + $0x5]] }
 0x168   : > { %v361_v35 = vpop.permute.xlu0 %360 }
 0x169   : > { %v362_v36 = vrot.slane %v361_v35, 7 }
 0x16b   : > { %v364_v37 = vsel %vm363_vm4, %v362_v36, %v361_v35  ;;  %v582_v36 = vstv %s832_s28  ;;  %s295_s28 = scalar_lea.vmem [#allocation10], %s805_s24 }
 0x16c   : > { %369 = vst.msk [vmem:[#allocation2] sm:$0x7] %vm368_vm5, %v364_v37 }
 0x173   : > { %v1264_v40 = vld [vmem:[#allocation2] sm:$0x7] }
 0x174   : > { %v530_v41 = vmul.f32 %v529_v38, %v1264_v40  ;;  %v510_v42 = vmul.f32 %v509_v39, %v1264_v40  ;;  %v520_v44 = vmul.f32 %v519_v43, %v1264_v40  ;;  %v540_v46 = vmul.f32 %v539_v45, %v1264_v40  ;;  %v605_v45 = vld [vmem:[#allocation8 + $0x2] ss:$4 sm:$0x3] }
 0x175   : > { %v424_v48 = vmul.f32 %v423_v47, %v1264_v40  ;;  %v467_v50 = vmul.f32 %v466_v49, %v1264_v40  ;;  %v477_v52 = vmul.f32 %v476_v51, %v1264_v40  ;;  %v454_v54 = vmul.f32 %v453_v53, %v1264_v40 }
 0x176   : > { %532 = vrot.lane.b32.xlu0 %v530_v41, %s1079_s6  ;;  %512 = vrot.lane.b32.xlu1 %v510_v42, %s1080_s9  ;;  %v563_v56 = vmul.f32 %v562_v55, %v1264_v40  ;;  %v573_v58 = vmul.f32 %v572_v57, %v1264_v40  ;;  %v507_v0 = vmul.f32 %v506_v60, %v1264_v40  ;;  %v376_v38 = vstv %s809_s23 }
 0x177   : > { %v434_v19 = vmul.f32 %v433_v16, %v1264_v40  ;;  %v464_v22 = vmul.f32 %v463_v17, %v1264_v40  ;;  %v444_v26 = vmul.f32 %v443_v21, %v1264_v40  ;;  %v553_v31 = vmul.f32 %v552_v28, %v1264_v40 }
 0x178   : > { %v487_v33 = vmul.f32 %v486_v32, %v1264_v40  ;;  %v497_v35 = vmul.f32 %v496_v34, %v1264_v40  ;;  %v583_v37 = vmul.f32 %v582_v36, %v1264_v40  ;;  %v377_v39 = vmul.f32 %v376_v38, %v1264_v40 }
 0x179   : > { %v398_v41 = vstv %s811_s30  ;;  %v420_v47 = vstv %s813_s7  ;;  %v387_v53 = vstv %s810_s13  ;;  %s675_s7 = scalar_lea.hbm %s1378_s5, %s841_s26  ;;  %s663_s13 = scalar_lea.sflag [#allocation5], %s1235_s12 }
 0x17a   : > { %522 = vrot.lane.b32.xlu1 %v520_v44, %s1081_s15  ;;  %v399_v42 = vmul.f32 %v398_v41, %v1264_v40  ;;  %v371_v41 = vld [vmem:[#allocation2] sm:$0x3] }
 0x17e   : > { %542 = vrot.lane.b32.xlu1 %v540_v46, %s1082_s27 }
 0x182   : > { %426 = vrot.lane.b32.xlu1 %v424_v48, %s1080_s9 }
 0x186   : > { %469 = vrot.lane.b32.xlu1 %v467_v50, %s1080_s9 }
 0x18a   : > { %479 = vrot.lane.b32.xlu1 %v477_v52, %s1081_s15 }
 0x18e   : > { %456 = vrot.lane.b32.xlu1 %v454_v54, %s1082_s27  ;;  %v421_v54 = vmul.f32 %v420_v47, %v1264_v40 }
 0x192   : > { %565 = vrot.lane.b32.xlu1 %v563_v56, %s1081_s15 }
 0x196   : > { %575 = vrot.lane.b32.xlu1 %v573_v58, %s1079_s6 }
 0x1e8   : > { %v513_v59 = vpop.permute.xlu1 %512  ;;  %v533_v62 = vpop.permute.xlu0 %532 }
 0x1e9   : > { %v514_v61 = vrot.slane %v513_v59, 1  ;;  %v534_v2 = vrot.slane %v533_v62, 1 }
 0x1eb   : > { %v515_v63 = vsel %vm382_vm6, %v513_v59, %v514_v61  ;;  %v535_v10 = vsel %vm404_vm8, %v533_v62, %v534_v2  ;;  %v388_v59 = vmul.f32 %v387_v53, %v1264_v40  ;;  %v409_v62 = vstv %s812_s14 }
 0x1ec   : > { %v523_v1 = vpop.permute.xlu1 %522  ;;  %v517_v4 = vadd.f32 %v515_v63, %v507_v0 }
 0x1ed   : > { %v524_v3 = vrot.slane %v523_v1, 1 }
 0x1ef   : > { %v525_v5 = vsel %vm393_vm7, %v523_v1, %v524_v3 }
 0x1f0   : > { %v527_v6 = vadd.f32 %v525_v5, %v517_v4  ;;  %v543_v8 = vpop.permute.xlu1 %542  ;;  %v410_v4 = vmul.f32 %v409_v62, %v1264_v40 }
 0x1f1   : > { %v544_v11 = vrot.slane %v543_v8, 1 }
 0x1f2   : > { %v537_v12 = vadd.f32 %v535_v10, %v527_v6 }
 0x1f3   : > { %v545_v13 = vsel %vm415_vm9, %v543_v8, %v544_v11 }
 0x1f4   : > { %v547_v14 = vadd.f32 %v545_v13, %v537_v12  ;;  %v427_v15 = vpop.permute.xlu1 %426 }
 0x1f5   : > { %v428_v44 = vrot.slane %v427_v15, 1 }
 0x1f6   : > { %607 = vrot.lane.b32.xlu0 %v547_v14, %s1083_s11  ;;  %s370_s11 = sld [smem:[#allocation3]] }
 0x1f7   : > { %v429_v51 = vsel %vm382_vm6, %v427_v15, %v428_v44 }
 0x1f8   : > { %v470_v18 = vpop.permute.xlu1 %469  ;;  %v431_v57 = vadd.f32 %v429_v51, %v421_v54 }
 0x1f9   : > { %v471_v20 = vrot.slane %v470_v18, 1 }
 0x1fa   : > { %436 = vrot.lane.b32.xlu0 %v434_v19, %s1081_s15 }
 0x1fb   : > { %v472_v23 = vsel %vm382_vm6, %v470_v18, %v471_v20 }
 0x1fc   : > { %v474_v24 = vadd.f32 %v472_v23, %v464_v22  ;;  %v480_v25 = vpop.permute.xlu1 %479 }
 0x1fd   : > { %v481_v27 = vrot.slane %v480_v25, 1 }
 0x1fe   : > { %446 = vrot.lane.b32.xlu0 %v444_v26, %s1079_s6 }
 0x1ff   : > { %v482_v29 = vsel %vm393_vm7, %v480_v25, %v481_v27 }
 0x200   : > { %v1298_v30 = vadd.f32 %v482_v29, %v474_v24  ;;  %v457_v55 = vpop.permute.xlu1 %456 }
 0x201   : > { %v458_v60 = vrot.slane %v457_v55, 1 }
 0x202   : > { %555 = vrot.lane.b32.xlu0 %v553_v31, %s1080_s9 }
 0x203   : > { %v459_v5 = vsel %vm415_vm9, %v457_v55, %v458_v60  ;;  %v594_v60 = vld [vmem:[#allocation8 + $0x1] ss:$4 sm:$0x3] }
 0x204   : > { %v566_v1 = vpop.permute.xlu1 %565 }
 0x205   : > { %v567_v14 = vrot.slane %v566_v1, 1 }
 0x206   : > { %489 = vrot.lane.b32.xlu0 %v487_v33, %s1079_s6 }
 0x207   : > { %v568_v21 = vsel %vm393_vm7, %v566_v1, %v567_v14 }
 0x208   : > { %v576_v16 = vpop.permute.xlu1 %575 }
 0x209   : > { %v577_v22 = vrot.slane %v576_v16, 1 }
 0x20a   : > { %499 = vrot.lane.b32.xlu0 %v497_v35, %s1082_s27 }
 0x20b   : > { %v578_v27 = vsel %vm404_vm8, %v576_v16, %v577_v22 }
 0x20e   : > { %585 = vrot.lane.b32.xlu0 %v583_v37, %s1082_s27 }
 0x212   : > { %379 = vrot.lane.b32.xlu0 %v377_v39, %s1080_s9  ;;  %s828_s9 = sld [smem:[#allocation3 + $0x4]]  ;;  %v372_v39 = vstv %s370_s11 }
 0x213   : > { %v373_v44 = vmul.f32 %v372_v39, %v371_v41 }
 0x216   : > { %401 = vrot.lane.b32.xlu0 %v399_v42, %s1079_s6  ;;  %s1084_s6 = smov 2  }
 0x218   : > { %v549_v6 = vstv %s828_s9  ;;  %s1088_s9 = smov [#allocation10]  }
 0x219   : > { %v550_v12 = vmul.f32 %v549_v6, %v1264_v40 }
 0x268   : > { %v608_v43 = vpop.permute.xlu0 %607 }
 0x269   : > { %v609_v46 = vrot.slane %v608_v43, 1 }
 0x26b   : > { %v611_v48 = vsel %vm610_vm10, %v608_v43, %v609_v46 }
 0x26c   : > { %v613_v49 = vmul.f32 %v611_v48, %v605_v45  ;;  %v437_v50 = vpop.permute.xlu0 %436 }
 0x26d   : > { %v438_v52 = vrot.slane %v437_v50, 1 }
 0x26e   : > { %615 = vrot.lane.b32.xlu1 %v613_v49, %s1084_s6  ;;  %s1001_s6 = sshll.u32 %s1088_s9, 4  ;;  %s1002_s6 = int_to_ptr.vmem [resolvable:$false] %s1001_s6 }
 0x26f   : > { %v439_v56 = vsel %vm393_vm7, %v437_v50, %v438_v52  ;;  %s1003_s22 = scalar_lea.vmem %s1002_s6, 256 }
 0x270   : > { %v447_v58 = vpop.permute.xlu0 %446  ;;  %v441_v63 = vadd.f32 %v439_v56, %v431_v57 }
 0x271   : > { %v448_v61 = vrot.slane %v447_v58, 1 }
 0x272   : > { %390 = vrot.lane.b32.xlu1 %v388_v59, %s1081_s15  ;;  %s1085_s15 = smov 127   ;;  %v591_v59 = vld [vmem:[#allocation8] ss:$4 sm:$0x3] }
 0x273   : > { %v449_v0 = vsel %vm404_vm8, %v447_v58, %v448_v61 }
 0x274   : > { %v451_v2 = vadd.f32 %v449_v0, %v441_v63  ;;  %v556_v3 = vpop.permute.xlu0 %555 }
 0x275   : > { %v557_v8 = vrot.slane %v556_v3, 1 }
 0x276   : > { %412 = vrot.lane.b32.xlu1 %v410_v4, %s1082_s27  ;;  %v461_v10 = vadd.f32 %v459_v5, %v451_v2  ;;  %s1086_s27 = smov 124   ;;  %v631_v2 = vld [vmem:[#allocation8 + $0x3] ss:$4 sm:$0x3] }
 0x277   : > { %v558_v11 = vsel %vm382_vm6, %v556_v3, %v557_v8 }
 0x278   : > { %v490_v13 = vpop.permute.xlu0 %489  ;;  %596 = vrot.lane.b32.xlu0 %v461_v10, %s1085_s15  ;;  %v560_v17 = vadd.f32 %v558_v11, %v550_v12  ;;  %v641_v11 = vld [vmem:[%s1239_s10] sm:$0x3]  ;;  %s677_s10 = sshll.u32 %s295_s28, 4  ;;  %s678_s10 = int_to_ptr.vmem [resolvable:$true] %s677_s10 }
 0x279   : > { %v491_v15 = vrot.slane %v490_v13, 1  ;;  %s997_s14 = scalar_lea.vmem %s678_s10, 128  ;;  %p1004_p13 = scmp.lt.s32.totalorder %s678_s10, %s1002_s6 }
 0x27a   : > { %v570_v24 = vadd.f32 %v568_v21, %v560_v17  ;;  %v652_v17 = vsub.s32 0, %v1254_v7  ;;  %p998_p2 = scmp.ne.s32.totalorder %s678_s10, %s997_s14  ;;  %p1005_p3 = scmp.lt.s32.totalorder %s1003_s22, %s997_s14 }
 0x27b   : > { %v492_v18 = vsel %vm404_vm8, %v490_v13, %v491_v15 }
 0x27c   : > { %v494_v19 = vadd.f32 %v492_v18, %v1298_v30  ;;  %v500_v20 = vpop.permute.xlu0 %499  ;;  %v580_v29 = vadd.f32 %v578_v27, %v570_v24  ;;  %v656_v18 = vsub.s32 1, %v1254_v7  ;;  %p999_p6 = pnand %p998_p2, %p1396_p4  ;;  %p1006_p7 = por %p1005_p3, %p1004_p13 }
 0x27d   : > { %v501_v23 = vrot.slane %v500_v20, 1 }
 0x27e   : > { %p1000_p8 = pneg %p999_p6 }
 0x27f   : > { %v502_v25 = vsel %vm415_vm9, %v500_v20, %v501_v23 }
 0x280   : > { %v504_v40 = vadd.f32 %v502_v25, %v494_v19  ;;  %v586_v26 = vpop.permute.xlu0 %585  ;;  %p1007_p10 = pnand %p1006_p7, %p1000_p8 }
 0x281   : > { %v587_v28 = vrot.slane %v586_v26, 1 }
 0x283   : > { %v588_v31 = vsel %vm415_vm9, %v586_v26, %v587_v28 }
 0x284   : > { %v590_v32 = vadd.f32 %v588_v31, %v580_v29  ;;  %v380_v36 = vpop.permute.xlu0 %379 }
 0x285   : > { %v381_v38 = vrot.slane %v380_v36, 1 }
 0x286   : > { %633 = vrot.lane.b32.xlu0 %v590_v32, %s1086_s27 }
 0x287   : > { %v383_v43 = vsel %vm382_vm6, %v380_v36, %v381_v38 }
 0x288   : > { %v402_v45 = vpop.permute.xlu0 %401  ;;  %v385_v47 = vadd.f32 %v383_v43, %v373_v44 }
 0x289   : > { %v403_v49 = vrot.slane %v402_v45, 1 }
 0x28b   : > { %v405_v53 = vsel %vm404_vm8, %v402_v45, %v403_v49 }
 0x2e0   : > { %v616_v30 = vpop.permute.xlu1 %615 }
 0x2e1   : > { %v617_v33 = vrot.slane %v616_v30, 7 }
 0x2e3   : > { %v619_v34 = vsel %vm618_vm11, %v617_v33, %v616_v30 }
 0x2e4   : > { %v621_v35 = vadd.f32 %v619_v34, %v504_v40  ;;  %v391_v37 = vpop.permute.xlu1 %390 }
 0x2e5   : > { %v392_v42 = vrot.slane %v391_v37, 1 }
 0x2e6   : > { %623 = vrot.lane.b32.xlu1 %v621_v35, %s1087_s29 }
 0x2e7   : > { %v394_v46 = vsel %vm393_vm7, %v391_v37, %v392_v42 }
 0x2e8   : > { %v413_v48 = vpop.permute.xlu1 %412  ;;  %v396_v50 = vadd.f32 %v394_v46, %v385_v47 }
 0x2e9   : > { %v414_v51 = vrot.slane %v413_v48, 1 }
 0x2ea   : > { %v597_v52 = vpop.permute.xlu0 %596  ;;  %v407_v54 = vadd.f32 %v405_v53, %v396_v50 }
 0x2eb   : > { %v416_v55 = vsel %vm415_vm9, %v413_v48, %v414_v51  ;;  %v598_v56 = vrot.slane %v597_v52, 1 }
 0x2ec   : > { %v418_v57 = vadd.f32 %v416_v55, %v407_v54 }
 0x2ed   : > { %v600_v61 = vsel %vm599_vm12, %v597_v52, %v598_v56 }
 0x2ee   : > { %v592_v63 = vmul.f32 %v591_v59, %v418_v57  ;;  %v602_v0 = vmul.f32 %v600_v61, %v594_v60 }
 0x2f0   : > { %v603_v5 = vadd.f32 %v602_v0, %v592_v63 }
 0x2f8   : > { %v634_v58 = vpop.permute.xlu0 %633 }
 0x2f9   : > { %v635_v62 = vrot.slane %v634_v58, 1 }
 0x2fb   : > { %v637_v3 = vsel %vm636_vm13, %v634_v58, %v635_v62 }
 0x2fc   : > { %v639_v8 = vmul.f32 %v637_v3, %v631_v2 }
 0x358   : > { %v624_v1 = vpop.permute.xlu1 %623 }
 0x359   : > { %v625_v4 = vrot.slane %v624_v1, 1 }
 0x35b   : > { %v627_v6 = vsel %vm626_vm14, %v624_v1, %v625_v4 }
 0x35c   : > { %v629_v10 = vadd.f32 %v627_v6, %v603_v5 }
 0x35e   : > { %v640_v12 = vadd.f32 %v639_v8, %v629_v10 }
 0x360   : > { %v642_v13 = vadd.f32 %v641_v11, %v640_v12 }
 0x362   : > { %v833_v14 = vmul.f32 -1.442695, %v642_v13 }
 0x364   : > { %924 = vpow2.f32 %v833_v14 }
 0x371   : > { %v925_v15 = vpop.eup %924 }
 0x372   : > { %v646_v16 = vadd.f32 1.0, %v925_v15 }
 0x374   : > { %926 = vrcp.f32 %v646_v16 }
 0x381   : > { %v927_v19 = vpop.eup %926 }
 0x382   : > { %v653_v20 = vrot.slane %v927_v19, %v652_v17  ;;  %v657_v21 = vrot.slane %v927_v19, %v656_v18 }
 0x384   : > { %v658_v22 = vcombine.low %v653_v20, %v657_v21 }
 0x386   : > { %v660_v23 = vmul.f32 %v658_v22, %v1260_v9 }
 0x388   : > { %661 = vst [vmem:[%s295_s28] sm:$0xff] %v660_v23 }
 0x389   : > { %1010 = shalt.err (!%p1007_p10)
}
 0x38a   : > { %s1011_s15 = scalar_lea.hbm %s675_s7, 128  ;;  %s1015_s29 = scalar_lea.hbm %s1378_s5, 256 }
 0x38b   : > { %p1012_p12 = scmp.ne.s32.totalorder %s675_s7, %s1011_s15  ;;  %p1016_p11 = scmp.lt.s32.totalorder %s675_s7, %s1378_s5 }
 0x38c   : > { %p1017_p0 = scmp.lt.s32.totalorder %s1015_s29, %s1011_s15 }
 0x38d   : > { %p1013_p5 = pnand %p1012_p12, %p1396_p4 }
 0x38e   : > { %p1018_p1 = por %p1017_p0, %p1016_p11 }
 0x38f   : > { %p1014_p9 = pneg %p1013_p5 }
 0x391   : > { %p1019_p2 = pnand %p1018_p1, %p1014_p9 }
 0x393   : > { %1022 = shalt.err (!%p1019_p2)
}
 0x394   : > { %852 = dma.vmem_to_hbm [thread:$0]  (%p1396_p4), %s678_s10, 128, %s675_s7, %s663_s13  }
 0x395 PF: > { %s689_s26 = sand.u32 1, %s1057_s18   ;;  %p1397_p6 = scmp.ne.s32.totalorder %s1384_s25, 0 }
 0x396   : > { %p1398_p8 = scmp.ge.s32.totalorder %s1069_s21, 2  ;;  %s690_s28 = scalar_lea.sflag [#allocation5], %s689_s26 }
 0x398   : > { %p866_p13 = pnand %p1398_p8, %p1397_p6 }
 0x39a   : > { %p867_p3 = pneg %p866_p13 }
 0x39c   : > { %1052 = dma.done.wait (%p867_p3), %s690_s28, 128  }
 0x39d   : > { %1054 = vsyncadd (%p867_p3), %s690_s28, 4294967168  ;;  %p20_p7 = scmp.ge.s32.totalorder %s1176_s8, 4   ;;  %s1399_s18 = smov %s1061_s19 }
 0x39e   : > { %s1400_s19 = smov %s1065_s20  ;;  %s1401_s20 = smov %s1194_s16 }
 0x39f   : > { %s1402_s21 = smov %s1176_s8  ;;  %22 = sbr.rel (!%p20_p7) target bundleno = 7 (0x7), region = 103 }
 0x3a4   :  { %695 = vsyncpa [#allocation4], 1 }
 0x3a5   :  { %697 = vsyncpa [#allocation4 + $0x1], 1 }
 0x3a6   :  { %698 = vsyncpa [#allocation9], 1 }
 0x3a7   :  { %699 = vsyncpa [#allocation5], 1 }
 0x3a8   :  { %701 = vsyncpa [#allocation5 + $0x1], 1 }
 0x3a9   :  { %702 = vsyncpa [#allocation6], 1 }
 0x3aa   :  { %704 = vsyncpa [#allocation6 + $0x1], 1 }

</bundles_post_ra>
